<compile_context>
chip_gen: v7x
topology: tpu7x:2x2x1
jax: 0.10.0
libtpu: 0.0.40
codegen_flags: <defaults>
</compile_context>

<pallas_src>
import functools

import jax
import jax.numpy as jnp
import numpy as np
from jax import lax
from jax.experimental import pallas as pl
from jax.experimental.pallas import tpu as pltpu


def _pick_tile(n, target, align):
    """Tile for a blocked axis: the full size if small / not alignable, else
    the largest multiple of `align` that divides n and is <= target."""
    if n <= target or n % align:
        return n
    t = (target // align) * align
    while t >= align:
        if n % t == 0:
            return t
        t -= align
    return n


# ----------------------------------------------------------------------------
# Kernel 1: batched input projection  xg = X @ W_ih^T + b_ih
#   grid = (M blocks, K blocks); K (the feature dim D) is a reduction axis with
#   a VMEM accumulator; output last dim is the full 3H slab (lane-dense at the
#   production hidden=128 -> 3H=384).
# ----------------------------------------------------------------------------
def _xproj_kernel(x_ref, w_ref, b_ref, o_ref, acc_ref):
    # x_ref: (tm, tk)   w_ref: (tk, 3H)   b_ref: (1, 3H)   o_ref: (tm, 3H)
    @pl.when(pl.program_id(1) == 0)
    def _():
        acc_ref[...] = jnp.zeros_like(acc_ref)

    acc_ref[...] += jnp.dot(x_ref[...], w_ref[...],
                            preferred_element_type=jnp.float32)

    @pl.when(pl.program_id(1) == pl.num_programs(1) - 1)
    def _():
        o_ref[...] = acc_ref[...] + b_ref[...]


def input_projection(x, w_ih_t, b_ih, *, tm=None, tk=None):
    m, d = x.shape
    g3 = w_ih_t.shape[1]
    tm = _pick_tile(m, 256, 8) if tm is None else tm
    tk = _pick_tile(d, 512, 128) if tk is None else tk
    cost = pl.CostEstimate(
        flops=2 * m * d * g3,
        transcendentals=0,
        bytes_accessed=4 * (m * d + d * g3 + m * g3),
    )
    return pl.pallas_call(
        _xproj_kernel,
        out_shape=jax.ShapeDtypeStruct((m, g3), jnp.float32),
        grid_spec=pltpu.PrefetchScalarGridSpec(
            num_scalar_prefetch=0,
            grid=(m // tm, d // tk),
            in_specs=[
                pl.BlockSpec((tm, tk), lambda i, k: (i, k)),
                pl.BlockSpec((tk, g3), lambda i, k: (k, 0)),
                pl.BlockSpec((1, g3), lambda i, k: (0, 0)),
            ],
            out_specs=pl.BlockSpec((tm, g3), lambda i, k: (i, 0)),
            scratch_shapes=[pltpu.VMEM((tm, g3), jnp.float32)],
        ),
        compiler_params=pltpu.CompilerParams(
            dimension_semantics=("parallel", "arbitrary"),
        ),
        cost_estimate=cost,
    )(x, w_ih_t, b_ih.reshape(1, g3))


# ----------------------------------------------------------------------------
# Kernel 2: GRU recurrence (PyTorch gate order r, z, n) + mean over T.
#   Only the small recurrent matmul (BB, H) x (H, 3H) runs inside the serial
#   time loop; xg (with b_ih already folded in) is read per step.  Grid is
#   over independent batch blocks -> "parallel" (2 TCs on v7x).
# ----------------------------------------------------------------------------
def _gru_mean_kernel(xg_ref, whh_ref, bhh_ref, o_ref):
    # xg_ref:  (T, BB, 3H)  precomputed x @ W_ih^T + b_ih for this batch block
    # whh_ref: (H, 3H)      transposed weight_hh_l0
    # bhh_ref: (1, 3H)
    # o_ref:   (BB, H)      temporal mean of hidden states
    t_max = xg_ref.shape[0]
    bb, hdim = o_ref.shape
    whh = whh_ref[...]
    bhh = bhh_ref[...]

    def step(t, carry):
        h_prev, acc = carry
        xg = xg_ref[t]                                                 # (BB, 3H)
        hg = jnp.dot(h_prev, whh, preferred_element_type=jnp.float32) + bhh
        # Gate slices are lane-aligned when hidden is a multiple of 128
        # (production hidden=128); small demo hidden only costs XLU copies.
        r = jax.nn.sigmoid(xg[:, :hdim] + hg[:, :hdim])
        z = jax.nn.sigmoid(xg[:, hdim:2 * hdim] + hg[:, hdim:2 * hdim])
        n_g = jnp.tanh(xg[:, 2 * hdim:] + r * hg[:, 2 * hdim:])
        h_new = (1.0 - z) * n_g + z * h_prev
        return h_new, acc + h_new

    h0 = jnp.zeros((bb, hdim), jnp.float32)
    _, acc = lax.fori_loop(0, t_max, step, (h0, h0))
    # reduction='mean' with seq_len=None -> mean over the full time axis.
    # TODO(synk): reduction='key' / per-sample seq_len masking and the
    # bidirectional / num_layers>1 GRU variants are not implemented here.
    o_ref[...] = acc * (1.0 / float(t_max))


def gru_mean(xg, w_hh_t, b_hh, *, batch_block=None):
    t, b, g3 = xg.shape
    hdim = w_hh_t.shape[0]
    bb = _pick_tile(b, 128, 8) if batch_block is None else batch_block
    cost = pl.CostEstimate(
        flops=2 * t * b * hdim * g3 + 10 * t * b * hdim,
        transcendentals=t * b * 3 * hdim,
        bytes_accessed=4 * (t * b * g3 + hdim * g3 + b * hdim),
    )
    return pl.pallas_call(
        _gru_mean_kernel,
        out_shape=jax.ShapeDtypeStruct((b, hdim), jnp.float32),
        grid_spec=pltpu.PrefetchScalarGridSpec(
            num_scalar_prefetch=0,
            grid=(b // bb,),
            in_specs=[
                pl.BlockSpec((t, bb, g3), lambda i: (0, i, 0)),
                pl.BlockSpec((hdim, g3), lambda i: (0, 0)),
                pl.BlockSpec((1, g3), lambda i: (0, 0)),
            ],
            out_specs=pl.BlockSpec((bb, hdim), lambda i: (i, 0)),
        ),
        compiler_params=pltpu.CompilerParams(
            dimension_semantics=("parallel",),
        ),
        cost_estimate=cost,
    )(xg, w_hh_t, b_hh.reshape(1, g3))


# ----------------------------------------------------------------------------
# Full Seq forward (reduction='mean', seq_len=None, keys=None)
# ----------------------------------------------------------------------------
def seq_forward(feat, params, seq_len_max, *, proj_tm=None, proj_tk=None):
    n = feat.shape[0]
    assert n % seq_len_max == 0
    b = n // seq_len_max
    d = int(np.prod(feat.shape[1:]))
    hdim = params["w_hh_t"].shape[0]
    # Contract with the caller (same as torch .view): rows of `feat` are
    # time-major, i.e. flat row index = t * B + b.
    x = feat.reshape(n, d)
    xg = input_projection(x, params["w_ih_t"], params["b_ih"],
                          tm=proj_tm, tk=proj_tk)                 # (T*B, 3H)
    xg = xg.reshape(seq_len_max, b, 3 * hdim)                     # (T, B, 3H)
    return gru_mean(xg, params["w_hh_t"], params["b_hh"])         # (B, H)


# Pure-JAX reference of the exact same math (correctness check).
def reference(feat, params, seq_len_max):
    n = feat.shape[0]
    b = n // seq_len_max
    d = int(np.prod(feat.shape[1:]))
    hdim = params["w_hh_t"].shape[0]
    seq = feat.reshape(seq_len_max, b, d)

    def step(h_prev, xt):
        xg = xt @ params["w_ih_t"] + params["b_ih"]
        hg = h_prev @ params["w_hh_t"] + params["b_hh"]
        r = jax.nn.sigmoid(xg[:, :hdim] + hg[:, :hdim])
        z = jax.nn.sigmoid(xg[:, hdim:2 * hdim] + hg[:, hdim:2 * hdim])
        n_g = jnp.tanh(xg[:, 2 * hdim:] + r * hg[:, 2 * hdim:])
        h_new = (1.0 - z) * n_g + z * h_prev
        return h_new, h_new

    h0 = jnp.zeros((b, hdim), jnp.float32)
    _, hs = lax.scan(step, h0, seq)
    return hs.mean(0)


if __name__ == "__main__":
    # Small deterministic config (stands in for the production
    # in_channel=36864 / hidden=128 setting).
    in_channel = 256               # D: flattened per-frame feature dim
    hidden = 32                    # hidden_size
    seq_len_max, batch = 8, 2
    N = seq_len_max * batch

    key = jax.random.PRNGKey(0)
    k_feat, k_wih, k_whh, k_bih, k_bhh = jax.random.split(key, 5)

    feat = jax.random.normal(k_feat, (N, in_channel), dtype=jnp.float32)

    # PyTorch GRU parameters (gate order r, z, n), stored pre-transposed.
    w_ih = 0.1 * jax.random.normal(k_wih, (3 * hidden, in_channel), dtype=jnp.float32)
    w_hh = 0.1 * jax.random.normal(k_whh, (3 * hidden, hidden), dtype=jnp.float32)
    params = dict(
        w_ih_t=jnp.transpose(w_ih),            # (D, 3H)
        w_hh_t=jnp.transpose(w_hh),            # (H, 3H)
        b_ih=0.1 * jax.random.normal(k_bih, (3 * hidden,), dtype=jnp.float32),
        b_hh=0.1 * jax.random.normal(k_bhh, (3 * hidden,), dtype=jnp.float32),
    )

    # Explicit small tiles so the demo exercises the multi-block M / K-reduction
    # path of kernel 1 (grid = (2, 2)).
    run = jax.jit(functools.partial(seq_forward, seq_len_max=seq_len_max,
                                    proj_tm=8, proj_tk=128))
    out = jax.block_until_ready(run(feat, params))

    ref = jax.block_until_ready(reference(feat, params, seq_len_max))
    assert out.shape == (batch, hidden), out.shape
    np.testing.assert_allclose(np.asarray(out), np.asarray(ref), rtol=1e-3, atol=1e-3)

    print("KERNEL_OK")
</pallas_src>

<mosaic_0001>
module attributes {stable_mosaic.version = 11 : i64} {
  func.func @_gru_mean_kernel(%arg0: i32, %arg1: memref<8x2x96xf32, #tpu.memory_space<vmem>>, %arg2: memref<32x96xf32, #tpu.memory_space<vmem>>, %arg3: memref<1x96xf32, #tpu.memory_space<vmem>>, %arg4: memref<2x32xf32, #tpu.memory_space<vmem>>) attributes {dimension_semantics = [#tpu.dimension_semantics<parallel>], iteration_bounds = array<i64: 1>, scalar_prefetch = 0 : i64, scratch_operands = 0 : i64, tpu.core_type = #tpu.core_type<tc>, window_params = [{transform_indices = @transform_0, window_bounds = array<i64: 8, 2, 96>}, {pipeline_mode = #tpu.pipeline_mode<synchronous>, transform_indices = @transform_1, window_bounds = array<i64: 32, 96>}, {pipeline_mode = #tpu.pipeline_mode<synchronous>, transform_indices = @transform_2, window_bounds = array<i64: 1, 96>}, {transform_indices = @transform_3, window_bounds = array<i64: 2, 32>}]} {
    %c0 = arith.constant 0 : index
    %c0_0 = arith.constant 0 : index
    %0 = vector.load %arg2[%c0, %c0_0] : memref<32x96xf32, #tpu.memory_space<vmem>>, vector<32x96xf32>
    %c0_1 = arith.constant 0 : index
    %c0_2 = arith.constant 0 : index
    %1 = vector.load %arg3[%c0_1, %c0_2] : memref<1x96xf32, #tpu.memory_space<vmem>>, vector<1x96xf32>
    %cst = arith.constant 0.000000e+00 : f32
    %2 = vector.broadcast %cst : f32 to vector<2x32xf32>
    %c0_i32 = arith.constant 0 : i32
    %c8_i32 = arith.constant 8 : i32
    %3 = arith.addi %c0_i32, %c8_i32 : i32
    %c1_i32 = arith.constant 1 : i32
    %4:2 = scf.for %arg5 = %c0_i32 to %3 step %c1_i32 iter_args(%arg6 = %2, %arg7 = %2) -> (vector<2x32xf32>, vector<2x32xf32>)  : i32 {
      %8 = arith.index_cast %arg5 : i32 to index
      %c0_7 = arith.constant 0 : index
      %c0_8 = arith.constant 0 : index
      %9 = vector.load %arg1[%8, %c0_7, %c0_8] : memref<8x2x96xf32, #tpu.memory_space<vmem>>, vector<1x2x96xf32>
      %10 = vector.shape_cast %9 : vector<1x2x96xf32> to vector<2x96xf32>
      %cst_9 = arith.constant dense<0.000000e+00> : vector<2x96xf32>
      %11 = tpu.matmul %arg6, %0, %cst_9 {dimension_numbers = #tpu.dot_dimension_numbers<[1], [0], [0], [1], [0, 0, 1, 1], [], []>} : vector<2x32xf32>, vector<32x96xf32>, vector<2x96xf32> -> vector<2x96xf32>
      %12 = vector.broadcast %1 : vector<1x96xf32> to vector<2x96xf32>
      %13 = arith.addf %11, %12 : vector<2x96xf32>
      %14 = vector.extract_strided_slice %10 {offsets = [0, 0], sizes = [2, 32], strides = [1, 1]} : vector<2x96xf32> to vector<2x32xf32>
      %15 = vector.extract_strided_slice %13 {offsets = [0, 0], sizes = [2, 32], strides = [1, 1]} : vector<2x96xf32> to vector<2x32xf32>
      %16 = arith.addf %14, %15 : vector<2x32xf32>
      %17 = arith.negf %16 : vector<2x32xf32>
      %18 = math.exp %17 : vector<2x32xf32>
      %cst_10 = arith.constant 1.000000e+00 : f32
      %19 = vector.broadcast %cst_10 : f32 to vector<2x32xf32>
      %20 = arith.addf %19, %18 : vector<2x32xf32>
      %21 = arith.divf %19, %20 : vector<2x32xf32>
      %22 = vector.extract_strided_slice %10 {offsets = [0, 32], sizes = [2, 32], strides = [1, 1]} : vector<2x96xf32> to vector<2x32xf32>
      %23 = vector.extract_strided_slice %13 {offsets = [0, 32], sizes = [2, 32], strides = [1, 1]} : vector<2x96xf32> to vector<2x32xf32>
      %24 = arith.addf %22, %23 : vector<2x32xf32>
      %25 = arith.negf %24 : vector<2x32xf32>
      %26 = math.exp %25 : vector<2x32xf32>
      %cst_11 = arith.constant 1.000000e+00 : f32
      %27 = vector.broadcast %cst_11 : f32 to vector<2x32xf32>
      %28 = arith.addf %27, %26 : vector<2x32xf32>
      %29 = arith.divf %27, %28 : vector<2x32xf32>
      %30 = vector.extract_strided_slice %10 {offsets = [0, 64], sizes = [2, 32], strides = [1, 1]} : vector<2x96xf32> to vector<2x32xf32>
      %31 = vector.extract_strided_slice %13 {offsets = [0, 64], sizes = [2, 32], strides = [1, 1]} : vector<2x96xf32> to vector<2x32xf32>
      %32 = arith.mulf %21, %31 : vector<2x32xf32>
      %33 = arith.addf %30, %32 : vector<2x32xf32>
      %34 = math.tanh %33 : vector<2x32xf32>
      %cst_12 = arith.constant 1.000000e+00 : f32
      %35 = vector.broadcast %cst_12 : f32 to vector<2x32xf32>
      %36 = arith.subf %35, %29 : vector<2x32xf32>
      %37 = arith.mulf %36, %34 : vector<2x32xf32>
      %38 = arith.mulf %29, %arg6 : vector<2x32xf32>
      %39 = arith.addf %37, %38 : vector<2x32xf32>
      %40 = arith.addf %arg7, %39 : vector<2x32xf32>
      scf.yield %39, %40 : vector<2x32xf32>, vector<2x32xf32>
    }
    %c8_i32_3 = arith.constant 8 : i32
    %cst_4 = arith.constant 1.250000e-01 : f32
    %5 = vector.broadcast %cst_4 : f32 to vector<2x32xf32>
    %6 = arith.mulf %4#1, %5 : vector<2x32xf32>
    %c0_5 = arith.constant 0 : index
    %c0_6 = arith.constant 0 : index
    %7 = vector.load %arg4[%c0_5, %c0_6] : memref<2x32xf32, #tpu.memory_space<vmem>>, vector<2x32xf32>
    tpu.vector_store %arg4[%c0_5, %c0_6], %6 {strides = array<i32>} : memref<2x32xf32, #tpu.memory_space<vmem>>, vector<2x32xf32>,
    return
  }
  func.func @transform_0(%arg0: i32) -> (i32, i32, i32) {
    %c0_i32 = arith.constant 0 : i32
    %c0_i32_0 = arith.constant 0 : i32
    %c0_i32_1 = arith.constant 0 : i32
    return %c0_i32, %arg0, %c0_i32_0 : i32, i32, i32
  }
  func.func @transform_1(%arg0: i32) -> (i32, i32) {
    %c0_i32 = arith.constant 0 : i32
    %c0_i32_0 = arith.constant 0 : i32
    %c0_i32_1 = arith.constant 0 : i32
    return %c0_i32, %c0_i32_0 : i32, i32
  }
  func.func @transform_2(%arg0: i32) -> (i32, i32) {
    %c0_i32 = arith.constant 0 : i32
    %c0_i32_0 = arith.constant 0 : i32
    %c0_i32_1 = arith.constant 0 : i32
    return %c0_i32, %c0_i32_0 : i32, i32
  }
  func.func @transform_3(%arg0: i32) -> (i32, i32) {
    %c0_i32 = arith.constant 0 : i32
    %c0_i32_0 = arith.constant 0 : i32
    return %arg0, %c0_i32 : i32, i32
  }
}

module attributes {stable_mosaic.version = 11 : i64} {
  func.func @_xproj_kernel(%arg0: i32, %arg1: i32, %arg2: memref<8x128xf32, #tpu.memory_space<vmem>>, %arg3: memref<128x96xf32, #tpu.memory_space<vmem>>, %arg4: memref<1x96xf32, #tpu.memory_space<vmem>>, %arg5: memref<8x96xf32, #tpu.memory_space<vmem>>, %arg6: memref<8x96xf32, #tpu.memory_space<vmem>>) attributes {dimension_semantics = [#tpu.dimension_semantics<parallel>, #tpu.dimension_semantics<arbitrary>], iteration_bounds = array<i64: 2, 2>, scalar_prefetch = 0 : i64, scratch_operands = 1 : i64, tpu.core_type = #tpu.core_type<tc>, window_params = [{transform_indices = @transform_0, window_bounds = array<i64: 8, 128>}, {transform_indices = @transform_1, window_bounds = array<i64: 128, 96>}, {pipeline_mode = #tpu.pipeline_mode<synchronous>, transform_indices = @transform_2, window_bounds = array<i64: 1, 96>}, {transform_indices = @transform_3, window_bounds = array<i64: 8, 96>}]} {
    %c0_i32 = arith.constant 0 : i32
    %0 = arith.cmpi eq, %arg1, %c0_i32 : i32
    %1 = arith.extui %0 : i1 to i32
    %c0_i32_0 = arith.constant 0 : i32
    %2 = arith.cmpi ne, %1, %c0_i32_0 : i32
    scf.if %2 {
      %cst_9 = arith.constant 0.000000e+00 : f32
      %12 = vector.broadcast %cst_9 : f32 to vector<8x96xf32>
      %c0_10 = arith.constant 0 : index
      %c0_11 = arith.constant 0 : index
      %13 = vector.load %arg6[%c0_10, %c0_11] : memref<8x96xf32, #tpu.memory_space<vmem>>, vector<8x96xf32>
      tpu.vector_store %arg6[%c0_10, %c0_11], %12 {strides = array<i32>} : memref<8x96xf32, #tpu.memory_space<vmem>>, vector<8x96xf32>,
    } else {
    }
    %c0 = arith.constant 0 : index
    %c0_1 = arith.constant 0 : index
    %3 = vector.load %arg6[%c0, %c0_1] : memref<8x96xf32, #tpu.memory_space<vmem>>, vector<8x96xf32>
    %c0_2 = arith.constant 0 : index
    %c0_3 = arith.constant 0 : index
    %4 = vector.load %arg2[%c0_2, %c0_3] : memref<8x128xf32, #tpu.memory_space<vmem>>, vector<8x128xf32>
    %c0_4 = arith.constant 0 : index
    %c0_5 = arith.constant 0 : index
    %5 = vector.load %arg3[%c0_4, %c0_5] : memref<128x96xf32, #tpu.memory_space<vmem>>, vector<128x96xf32>
    %cst = arith.constant dense<0.000000e+00> : vector<8x96xf32>
    %6 = tpu.matmul %4, %5, %cst {dimension_numbers = #tpu.dot_dimension_numbers<[1], [0], [0], [1], [0, 0, 1, 1], [], []>} : vector<8x128xf32>, vector<128x96xf32>, vector<8x96xf32> -> vector<8x96xf32>
    %7 = arith.addf %3, %6 : vector<8x96xf32>
    %c0_6 = arith.constant 0 : index
    %c0_7 = arith.constant 0 : index
    %8 = vector.load %arg6[%c0_6, %c0_7] : memref<8x96xf32, #tpu.memory_space<vmem>>, vector<8x96xf32>
    tpu.vector_store %arg6[%c0_6, %c0_7], %7 {strides = array<i32>} : memref<8x96xf32, #tpu.memory_space<vmem>>, vector<8x96xf32>,
    %c1_i32 = arith.constant 1 : i32
    %9 = arith.cmpi eq, %arg1, %c1_i32 : i32
    %10 = arith.extui %9 : i1 to i32
    %c0_i32_8 = arith.constant 0 : i32
    %11 = arith.cmpi ne, %10, %c0_i32_8 : i32
    scf.if %11 {
      %c0_9 = arith.constant 0 : index
      %c0_10 = arith.constant 0 : index
      %12 = vector.load %arg6[%c0_9, %c0_10] : memref<8x96xf32, #tpu.memory_space<vmem>>, vector<8x96xf32>
      %c0_11 = arith.constant 0 : index
      %c0_12 = arith.constant 0 : index
      %13 = vector.load %arg4[%c0_11, %c0_12] : memref<1x96xf32, #tpu.memory_space<vmem>>, vector<1x96xf32>
      %14 = vector.broadcast %13 : vector<1x96xf32> to vector<8x96xf32>
      %15 = arith.addf %12, %14 : vector<8x96xf32>
      %c0_13 = arith.constant 0 : index
      %c0_14 = arith.constant 0 : index
      %16 = vector.load %arg5[%c0_13, %c0_14] : memref<8x96xf32, #tpu.memory_space<vmem>>, vector<8x96xf32>
      tpu.vector_store %arg5[%c0_13, %c0_14], %15 {strides = array<i32>} : memref<8x96xf32, #tpu.memory_space<vmem>>, vector<8x96xf32>,
    } else {
    }
    return
  }
  func.func @transform_0(%arg0: i32, %arg1: i32) -> (i32, i32) {
    %c0_i32 = arith.constant 0 : i32
    return %arg0, %arg1 : i32, i32
  }
  func.func @transform_1(%arg0: i32, %arg1: i32) -> (i32, i32) {
    %c0_i32 = arith.constant 0 : i32
    %c0_i32_0 = arith.constant 0 : i32
    return %arg1, %c0_i32 : i32, i32
  }
  func.func @transform_2(%arg0: i32, %arg1: i32) -> (i32, i32) {
    %c0_i32 = arith.constant 0 : i32
    %c0_i32_0 = arith.constant 0 : i32
    %c0_i32_1 = arith.constant 0 : i32
    return %c0_i32, %c0_i32_0 : i32, i32
  }
  func.func @transform_3(%arg0: i32, %arg1: i32) -> (i32, i32) {
    %c0_i32 = arith.constant 0 : i32
    %c0_i32_0 = arith.constant 0 : i32
    return %arg0, %c0_i32 : i32, i32
  }
}

</mosaic_0001>

<bundles_post_ra>
// kernel: seq_forward.2
= control target key start
LH: loop header
LB: loop body
LE: loop exit
PB: predicated region body
PF: predicated region fallthrough
CT: control target
= control target key end

     0   :  { %s606_s12 = smov 0   ;;  %s608_s13 = smov 0   ;;  %s694_s0 = inlined_call_operand.vmem [shape: f32[16,256], index: 0, kind: input, shape index: {}]   ;;  %s695_s1 = inlined_call_operand.vmem [shape: f32[256,96], index: 1, kind: input, shape index: {}]   ;;  %s696_s2 = inlined_call_operand.vmem [shape: f32[1,96], index: 2, kind: input, shape index: {}]   ;;  %s697_s3 = inlined_call_operand.vmem [shape: f32[16,96], index: 3, kind: output, shape index: {}]  }
   0x1   :  { %s610_s14 = smov 0   ;;  %s612_s15 = smov 0  }
   0x2   :  { %s614_s16 = smov 0  }
   0x3 LB: > { %s22_s17 = sadd.s32 1, %s572_s14  ;;  %s25_s18 = sadd.s32 1, %s576_s15  ;;  %s580_s16 = sphi %s614_s16, %s13_s16   ;;  %s576_s15 = sphi %s612_s15, %s701_s15   ;;  %s572_s14 = sphi %s610_s14, %s700_s14   ;;  %s568_s13 = sphi %s608_s13, %s699_s13   ;;  %s564_s12 = sphi %s606_s12, %s698_s12  }
   0x4   : > { %p23_p0 = scmp.ge.s32.totalorder %s22_s17, 2  ;;  %p411_p1 = scmp.ge.s32.totalorder %s580_s16, 1 }
   0x5   : > { %p165_p2 = scmp.lt.s32.totalorder %s580_s16, 5 }
   0x6   : > { %s703_s17 = smov (%p23_p0, %s22_s17), 0  ;;  %s705_s18 = smov (!%p23_p0, %s25_s18), %s576_s15 }
   0x7   : > { %p166_p3 = pnand %p411_p1, %p165_p2  ;;  %p27_p4 = scmp.ge.s32.totalorder %s705_s18, 2 }
   0x8   : > { %p196_p5 = scmp.lt.s32.totalorder (!%p166_p3), %s568_s13, 1  ;;  %p198_p6 = scmp.lt.s32.totalorder (!%p166_p3), %s564_s12, 1 }
   0x9   : > { %s707_s18 = smov (%p27_p4, %s705_s18), 0  ;;  %169 = sbr.rel (%p166_p3) target bundleno = 288 (0x120), region = 32 }
   0xa   : > { %s414_s19 = sshll.u32 (!%p166_p3), %s564_s12, 4  ;;  %p417_p8 = scmp.ne.s32.totalorder (!%p166_p3), %s564_s12, 0 }
   0xb   : > { %p205_p7 = scmp.lt.s32.totalorder (!%p166_p3), %s414_s19, 31 }
  0x10   : > { %s709_s13 = smov (!%p196_p5, %s568_s13), 1  ;;  %s711_s19 = smov (!%p205_p7, %s414_s19), 31 }
  0x11   : > { %s199_s20 = scalar_select %p198_p6, %s564_s12, 1 }
  0x12   : > { %s412_s21 = sshll.u32 %s709_s13, 1  ;;  %s416_s23 = sshll.u32 %s709_s13, 3  ;;  %vm218_vm0 = vcmask (!%p417_p8), 785408   ;;  %v582_v0 = vmov (!%p417_p8), 0.0  }
  0x13   : > { %s201_s22 = sadd.s32 %s412_s21, %s199_s20  ;;  %s644_s27 = scalar_lea.vmem %s697_s3, %s416_s23  ;;  %219 = vst.msk [vmem:[#allocation2] sm:$0xff] (!%p417_p8), %vm218_vm0, %v582_v0 }
  0x14   : > { %s413_s24 = sshll.u32 %s201_s22, 3  ;;  %s415_s4 = sshll.u32 %s711_s19, 3 }
  0x15   : > { %s649_s30 = scalar_lea.vmem %s694_s0, %s413_s24  ;;  %s654_s7 = scalar_lea.vmem %s695_s1, %s415_s4 }
  0x16   : > { %217 = sbr.rel (%p417_p8) target bundleno = 29 (0x1d), region = 36 }
  0x1d PF: > { %v222_v1 = vld [vmem:[%s654_s7] sm:$0xff]  ;;  %v223_v2 = vld [vmem:[%s654_s7 + $0x8] sm:$0xff]  ;;  %v224_v3 = vld [vmem:[%s654_s7 + $0x10] sm:$0xff]  ;;  %v583_v4 = vmov 0.0|0.0   ;;  %vm584_vm1 = vmmov 0   ;;  %v585_v7 = vmov 0.0  }
  0x1e   : > { %474 = vmatprep.subr.bf16.mxu0 %v583_v4  ;;  %v475_v5 = vpack.c.bf16 %v223_v2, %v222_v1  ;;  %v225_v6 = vld [vmem:[%s654_s7 + $0x18] sm:$0xff]  ;;  %471 = vmatprep.mubr.msk.f32.mxu0 %vm584_vm1, %v585_v7  ;;  %v226_v9 = vld [vmem:[%s654_s7 + $0x20] sm:$0xff]  ;;  %v227_v10 = vld [vmem:[%s654_s7 + $0x28] sm:$0xff]  ;;  %vm309_vm2 = vcmask 785408   ;;  %p418_p9 = scmp.ne.s32.totalorder %s564_s12, 1 }
  0x1f   : > { %v478_v8 = vpack.c.bf16 %v225_v6, %v224_v3  ;;  %v481_v11 = vpack.c.bf16 %v227_v10, %v226_v9  ;;  %v228_v12 = vld [vmem:[%s654_s7 + $0x30] sm:$0xff]  ;;  %v229_v13 = vld [vmem:[%s654_s7 + $0x38] sm:$0xff]  ;;  %v230_v15 = vld [vmem:[%s654_s7 + $0x40] sm:$0xff] }
  0x20   : > { %476 = vmatpush3.bf16.msra.mxu0 %v475_v5  ;;  %v484_v14 = vpack.c.bf16 %v229_v13, %v228_v12  ;;  %v231_v16 = vld [vmem:[%s654_s7 + $0x48] sm:$0xff]  ;;  %v232_v18 = vld [vmem:[%s654_s7 + $0x50] sm:$0xff]  ;;  %v233_v19 = vld [vmem:[%s654_s7 + $0x58] sm:$0xff] }
  0x21   : > { %477 = vmatprep.subr.bf16.mxu0 %v583_v4  ;;  %v487_v17 = vpack.c.bf16 %v231_v16, %v230_v15  ;;  %v490_v20 = vpack.c.bf16 %v233_v19, %v232_v18  ;;  %v234_v21 = vld [vmem:[%s654_s7 + $0x60] sm:$0xff]  ;;  %v235_v22 = vld [vmem:[%s654_s7 + $0x68] sm:$0xff]  ;;  %v236_v24 = vld [vmem:[%s654_s7 + $0x70] sm:$0xff] }
  0x22   : > { %v493_v23 = vpack.c.bf16 %v235_v22, %v234_v21  ;;  %v237_v25 = vld [vmem:[%s654_s7 + $0x78] sm:$0xff]  ;;  %v221_v27 = vld [vmem:[%s649_s30] sm:$0xff] }
  0x23   : > { %v496_v26 = vpack.c.bf16 %v237_v25, %v236_v24  ;;  %v220_v28 = vld [vmem:[#allocation2] sm:$0xff] }
  0x24   : > { %479 = vmatpush3.bf16.msra.mxu0 %v478_v8  ;;  %v419_v33 = vld [vmem:[%s696_s2] ss:$0 sm:$0xff] (!%p418_p9) }
  0x25   : > { %480 = vmatprep.subr.bf16.mxu0 %v583_v4 }
  0x28   : > { %482 = vmatpush3.bf16.msra.mxu0 %v481_v11 }
  0x29   : > { %483 = vmatprep.subr.bf16.mxu0 %v583_v4 }
  0x2c   : > { %485 = vmatpush3.bf16.msra.mxu0 %v484_v14 }
  0x2d   : > { %486 = vmatprep.subr.bf16.mxu0 %v583_v4 }
  0x30   : > { %488 = vmatpush3.bf16.msra.mxu0 %v487_v17 }
  0x31   : > { %489 = vmatprep.subr.bf16.mxu0 %v583_v4 }
  0x34   : > { %491 = vmatpush3.bf16.msra.mxu0 %v490_v20 }
  0x35   : > { %492 = vmatprep.subr.bf16.mxu0 %v583_v4 }
  0x38   : > { %494 = vmatpush3.bf16.msra.mxu0 %v493_v23 }
  0x39   : > { %495 = vmatprep.subr.bf16.mxu0 %v583_v4 }
  0x3c   : > { %497 = vmatpush3.bf16.msra.mxu0 %v496_v26 }
  0x3f   : > { %472 = vmatmul.mubr.f32.vlgmr.msra.gmra.mrb[0].mxu0 %v221_v27 }
 0x10f   : > { %314 = sbr.rel (%p418_p9) target bundleno = 288 (0x120), region = 40 }
 0x112   : > { %v304_v29 = vpop.f32.mrb[0].mxu0 }
 0x113   : > { %v308_v30 = vadd.f32 %v304_v29, %v220_v28  ;;  %v473_v31 = vpop.f32.mrb[1].mxu0 }
 0x115   : > { %310 = vst.msk [vmem:[#allocation2] sm:$0xff] %vm309_vm2, %v308_v30 }
 0x11c   : > { %v315_v32 = vld [vmem:[#allocation2] sm:$0xff] }
 0x11d   : > { %v323_v34 = vadd.f32 %v419_v33, %v315_v32 }
 0x11f   : > { %324 = vst.msk [vmem:[%s644_s27] sm:$0xff] %vm309_vm2, %v323_v34 }
 0x120 PF: > { %s13_s16 = sadd.s32 1, %s580_s16   ;;  %s698_s12 = smov %s572_s14 }
 0x121   : > { %p10_p10 = scmp.ge.s32.totalorder %s13_s16, 6   ;;  %s699_s13 = smov %s576_s15 }
 0x122   : > { %s700_s14 = smov %s703_s17  ;;  %s701_s15 = smov %s707_s18 }
 0x123   :  { %12 = sbr.rel (!%p10_p10) target bundleno = 3 (0x3), region = 73 }

// kernel: seq_forward.3
= control target key start
LH: loop header
LB: loop body
LE: loop exit
PB: predicated region body
PF: predicated region fallthrough
CT: control target
= control target key end

     0   :  { %8 = vsyncpa [#allocation3], 0  ;;  %v273_v5 = vmov 0.0   ;;  %v277_v6 = vmov 0.0   ;;  %s329_s22 = smov 0   ;;  %s356_s0 = inlined_call_operand.vmem [shape: f32[8,2,96], index: 0, kind: input, shape index: {}]   ;;  %s357_s1 = inlined_call_operand.vmem [shape: f32[32,96], index: 1, kind: input, shape index: {}]   ;;  %s358_s2 = inlined_call_operand.vmem [shape: f32[1,96], index: 2, kind: input, shape index: {}]   ;;  %s359_s3 = inlined_call_operand.hbm [shape: f32[2,32], index: 3, kind: output, shape index: {}]  }
   0x1   :  { %v315_v0 = vld [vmem:[%s357_s1] sm:$0xff]  ;;  %v16_v1 = vld [vmem:[%s357_s1 + $0x8] sm:$0xff]  ;;  %v17_v2 = vld [vmem:[%s357_s1 + $0x10] sm:$0xff] }
   0x2   :  { %v18_v3 = vld [vmem:[%s357_s1 + $0x18] sm:$0xff]  ;;  %v175_v4 = vld [vmem:[%s358_s2] ss:$0 sm:$0xff] }
   0x3 LB: > { %v195_v7 = vpack.c.bf16 %v16_v1, %v315_v0  ;;  %v285_v8 = vmov 0.0|0.0   ;;  %s286_s1 = smov 96   ;;  %v198_v9 = vpack.c.bf16 %v18_v3, %v17_v2  ;;  %vm287_vm0 = vmmov 0   ;;  %s289_s2 = smov 64   ;;  %s283_s22 = sphi %s329_s22, %s25_s22   ;;  %v279_v6 = vphi %v277_v6, %v138_v6   ;;  %v275_v5 = vphi %v273_v5, %v274_v5  }
   0x4   : > { %194 = vmatprep.subr.bf16.mxu0 %v285_v8  ;;  %38 = vrot.lane.b32.xlu0 %v279_v6, %s286_s1  ;;  %v288_v10 = vmov 0.0   ;;  %vm40_vm1 = vcmask 261120   ;;  %s174_s23 = sshll.u32 %s283_s22, 1  ;;  %s25_s22 = sadd.s32 1, %s283_s22  }
   0x5   : > { %196 = vmatpush3.bf16.msra.mxu0 %v195_v7  ;;  %191 = vmatprep.mubr.msk.f32.mxu0 %vm287_vm0, %v288_v10  ;;  %s29_s26 = scalar_lea.vmem %s356_s0, %s174_s23  ;;  %p22_p0 = scmp.ge.s32.totalorder %s25_s22, 8  }
   0x6   : > { %197 = vmatprep.subr.bf16.mxu0 %v285_v8  ;;  %v30_v15 = vld [vmem:[%s29_s26] sm:$0x3]  ;;  %s290_s27 = smov (%p22_p0), 96   ;;  %s291_s28 = smov (%p22_p0), [#allocation2]   ;;  %vm145_vm2 = vcmask (%p22_p0), 254976  }
   0x7   :  { %s153_s29 = sshll.u32 (%p22_p0), %s291_s28, 4  ;;  %s154_s29 = int_to_ptr.vmem [resolvable:$true] %s153_s29 }
   0x8   :  { %s237_s30 = scalar_lea.vmem (%p22_p0), %s154_s29, 32  ;;  %p242_p2 = scmp.lt.s32.totalorder (%p22_p0), %s154_s29, %s154_s29 }
   0x9   : > { %199 = vmatpush3.bf16.msra.mxu0 %v198_v9  ;;  %p238_p1 = scmp.ne.s32.totalorder (%p22_p0), %s154_s29, %s237_s30  ;;  %p243_p3 = scmp.lt.s32.totalorder (%p22_p0), %s237_s30, %s237_s30 }
   0xb   :  { %p244_p4 = por (%p22_p0), %p243_p3, %p242_p2 }
   0xd   :  { %p245_p5 = pnand (%p22_p0), %p244_p4, %p238_p1 }
  0x76   : > { %v39_v11 = vpop.permute.xlu0 %38 }
  0x77   : > { %192 = vmatmul.mubr.msk.f32.vlgmr.msra.gmra.mrb[0].mxu0 %vm40_vm1, %v39_v11 }
 0x14a   : > { %v109_v12 = vpop.f32.mrb[0].mxu0 }
 0x14b   : > { %v110_v13 = vadd.f32 %v175_v4, %v109_v12  ;;  %v193_v14 = vpop.f32.mrb[1].mxu0 }
 0x14d   : > { %121 = vrot.lane.b32.xlu0 %v110_v13, %s289_s2  ;;  %v113_v16 = vadd.f32 %v110_v13, %v30_v15 }
 0x14f   : > { %v177_v17 = vmul.f32 -1.442695, %v113_v16 }
 0x151   : > { %231 = vpow2.f32 %v177_v17 }
 0x15b   : > { %v232_v18 = vpop.eup %231 }
 0x15c   : > { %v117_v19 = vadd.f32 1.0, %v232_v18 }
 0x15e   : > { %233 = vrcp.f32 %v117_v19 }
 0x168   : > { %v234_v20 = vpop.eup %233 }
 0x169   : > { %v131_v26 = vsub.f32 1.0, %v234_v20  ;;  %v137_v28 = vmul.f32 %v279_v6, %v234_v20 }
 0x1bf   : > { %v122_v21 = vpop.permute.xlu0 %121 }
 0x1c0   : > { %v124_v22 = vmul.f32 %v234_v20, %v122_v21 }
 0x1c2   : > { %126 = vrot.lane.b32.xlu1 %v124_v22, %s289_s2 }
 0x234   : > { %v127_v23 = vpop.permute.xlu1 %126 }
 0x235   : > { %v129_v24 = vadd.f32 %v127_v23, %v30_v15 }
 0x237   : > { %235 = vtanh.f32 %v129_v24 }
 0x241   : > { %v236_v25 = vpop.eup %235 }
 0x242   : > { %133 = vrot.lane.b32.xlu1 %v236_v25, %s286_s1 }
 0x2b4   : > { %v134_v27 = vpop.permute.xlu1 %133 }
 0x2b5   : > { %v136_v29 = vmul.f32 %v134_v27, %v131_v26  ;;  %24 = sbr.rel (!%p22_p0) target bundleno = 3 (0x3), region = 40 }
 0x2b7   : > { %v138_v6 = vadd.f32 %v137_v28, %v136_v29  }
 0x2b9   : > { %v139_v30 = vadd.f32 %v275_v5, %v138_v6  }
 0x2bb   : > { %v274_v5 = vmov %v139_v30   ;;  %v140_v31 = vmul.f32 (%p22_p0), 0.125, %v139_v30 }
 0x2bd   :  { %142 = vrot.lane.b32.xlu0 %v140_v31, %s290_s27 }
 0x32f   :  { %v143_v32 = vpop.permute.xlu0 %142 }
 0x330   :  { %146 = vst.msk [vmem:[#allocation2] sm:$0x3] %vm145_vm2, %v143_v32 }
 0x331   :  { %248 = shalt.err (!%p245_p5)
}
 0x332   :  { %s249_s6 = scalar_lea.hbm %s359_s3, 32 }
 0x333   :  { %p250_p6 = scmp.ne.s32.totalorder %s359_s3, %s249_s6  ;;  %p253_p7 = scmp.lt.u32.totalorder %s249_s6, %s359_s3 }
 0x335   :  { %p255_p8 = pnand %p253_p7, %p250_p6 }
 0x337   :  { %258 = shalt.err (!%p255_p8)
}
 0x338   :  { %156 = dma.vmem_to_hbm [thread:$0]  %s154_s29, 32, %s359_s3, [#allocation3]  }
 0x339   :  { %271 = dma.done.wait [#allocation3], 32  }
 0x33a   :  { %272 = vsyncadd [#allocation3], 4294967264 }
 0x33b   :  { %160 = vsyncpa [#allocation3], 1 }

</bundles_post_ra>
